<compile_context>
chip_gen: v7x
topology: tpu7x:2x2x1
jax: 0.10.0
libtpu: 0.0.40
codegen_flags: <defaults>
</compile_context>

<pallas_src>
import functools

import jax
import jax.numpy as jnp
from jax.experimental import pallas as pl
from jax.experimental.pallas import tpu as pltpu


# ----------------------------------------------------------------------------
# Kernel
# ----------------------------------------------------------------------------
def _stacked_lstm_kernel(x0_ref, h0_ref, c0_ref, w_ref, b_ref,
                         w_out_ref, b_out_ref,
                         h1_ref, c1_ref, out_ref,
                         xh_scr, gates_scr,
                         *, weights_resident, bf16_act):
    # NOTE: the residual carry in xh_scr relies on
    #   (a) the layer axis being the LAST (innermost, "arbitrary") grid axis,
    #   (b) VMEM scratch persisting across grid steps.
    # Do NOT reorder the grid without reworking the carry.
    l = pl.program_id(1)
    num_layers = pl.num_programs(1)
    Hp = h0_ref.shape[-1]          # padded hidden size (multiple of 128)
    Kp = x0_ref.shape[-1]          # padded layer-input size (multiple of 128)

    # Layer 0: load the (padded) module input into the input half of the
    # fused [x | h] scratch.  Later layers reuse the residual carry there.
    @pl.when(l == 0)
    def _():
        xh_scr[:, 0:Kp] = x0_ref[...]

    h_prev = h0_ref[0]             # (TB, Hp)
    c_prev = c0_ref[0]             # (TB, Hp)
    xh_scr[:, Kp:Kp + Hp] = h_prev

    # Per-layer weight / bias.  Resident config: the whole (L, Kp+Hp, Gp)
    # stack sits in VMEM (constant index map -> DMA'd once per call) and we
    # index layer l dynamically; streamed config: a (1, ...) slab per step.
    if weights_resident:
        w_l = w_ref[l]             # (Kp+Hp, Gp) bf16
        b_l = b_ref[l]             # (1, Gp)     f32
    else:
        w_l = w_ref[0]
        b_l = b_ref[0]

    # Single fused gate matmul: [x | h] @ [W_ih^T ; W_hh^T] + (b_ih + b_hh).
    # bf16 operands on the MXU, f32 accumulation.  The (TB, 4Hp) result is
    # staged through an explicit VMEM scratch so only one Hp-wide gate slab
    # is live in vregs at a time (avoids spills at large Hp).
    xh = xh_scr[...].astype(jnp.bfloat16)
    gates_scr[...] = (jnp.dot(xh, w_l, preferred_element_type=jnp.float32)
                      + b_l)

    # Gate activations.  sigmoid via tanh = one EUP push instead of two.
    # On v6e/v7x the EUP has a bf16 path, so transcendentals run in bf16
    # there; the c/h state math stays f32.
    def _tanh(z):
        if bf16_act:
            return jnp.tanh(z.astype(jnp.bfloat16)).astype(jnp.float32)
        return jnp.tanh(z)

    def _sig(z):
        return 0.5 * _tanh(0.5 * z) + 0.5

    i_g = _sig(gates_scr[:, 0 * Hp:1 * Hp])
    f_g = _sig(gates_scr[:, 1 * Hp:2 * Hp])
    g_g = _tanh(gates_scr[:, 2 * Hp:3 * Hp])
    o_g = _sig(gates_scr[:, 3 * Hp:4 * Hp])

    c_new = f_g * c_prev + i_g * g_g
    h_new = o_g * _tanh(c_new)

    h1_ref[0] = h_new
    c1_ref[0] = c_new

    # Residual carry (dropout is identity: p=0 / eval mode):
    #   layer 0:  x <- h_1_0      layers > 0:  x <- x + h_1_i
    # Computed as a value (one vselect) so the last-layer h2o matmul can reuse
    # it in-register instead of a scratch store->load round-trip.
    # TODO(synk): training-mode dropout (p>0) would need pltpu.prng_* masks.
    carry = xh_scr[:, 0:Hp]
    x_new = jnp.where(l == 0, h_new, carry + h_new)
    xh_scr[:, 0:Hp] = x_new

    # Output head (h2o) on the final carried x; Op is a multiple of 128 so the
    # store is lane-dense (unmasked vst).
    @pl.when(l == num_layers - 1)
    def _():
        out_ref[...] = (
            jnp.dot(x_new.astype(jnp.bfloat16), w_out_ref[...],
                    preferred_element_type=jnp.float32)
            + b_out_ref[...])


# ----------------------------------------------------------------------------
# Parameter preparation (one-time, hoisted out of the per-call path)
# ----------------------------------------------------------------------------
def _round_up(x, m):
    return (x + m - 1) // m * m


def _pad_to(a, shape):
    return jnp.pad(a, [(0, s - d) for d, s in zip(a.shape, shape)])


def prepare_stacked_lstm_params(w_ih, w_hh, b_ih, b_hh, w_out, b_out):
    """Pack per-layer LSTMCell weights once.

    w_ih: list of (4H, in_l)   (in_0 = input_size, in_l>0 = rnn_size)
    w_hh: list of (4H, H);  b_ih / b_hh: list of (4H,)
    w_out: (O, H);  b_out: (O,)            (the h2o head; output_size > 0)
    """
    L = len(w_ih)
    H = w_hh[0].shape[1]
    D = w_ih[0].shape[1]
    O = w_out.shape[0]
    Hp = _round_up(H, 128)
    Kp = max(_round_up(D, 128), Hp)        # input half of the fused scratch
    Gp = 4 * Hp
    Op = _round_up(O, 128)

    def pad_gate_cols(wt):                 # (K, 4H) -> (K, 4Hp), per-gate pad
        k = wt.shape[0]
        w4 = wt.reshape(k, 4, H)
        w4 = jnp.pad(w4, ((0, 0), (0, 0), (0, Hp - H)))
        return w4.reshape(k, 4 * Hp)

    w_fused, b_fused = [], []
    for layer in range(L):
        wi = pad_gate_cols(jnp.asarray(w_ih[layer], jnp.float32).T)   # (in_l, Gp)
        wi = jnp.pad(wi, ((0, Kp - wi.shape[0]), (0, 0)))             # (Kp, Gp)
        wh = pad_gate_cols(jnp.asarray(w_hh[layer], jnp.float32).T)   # (H, Gp)
        wh = jnp.pad(wh, ((0, Hp - H), (0, 0)))                       # (Hp, Gp)
        w_fused.append(jnp.concatenate([wi, wh], axis=0))             # (Kp+Hp, Gp)
        bb = (jnp.asarray(b_ih[layer], jnp.float32)
              + jnp.asarray(b_hh[layer], jnp.float32)).reshape(1, 4, H)
        bb = jnp.pad(bb, ((0, 0), (0, 0), (0, Hp - H))).reshape(1, 4 * Hp)
        b_fused.append(bb)

    w_fused = jnp.stack(w_fused).astype(jnp.bfloat16)                 # (L, Kp+Hp, Gp)
    b_fused = jnp.stack(b_fused).astype(jnp.float32)                  # (L, 1, Gp)

    w_out_t = jnp.asarray(w_out, jnp.float32).T                       # (H, O)
    w_out_t = jnp.pad(w_out_t, ((0, Hp - H), (0, Op - O))).astype(jnp.bfloat16)
    b_out_p = jnp.pad(jnp.asarray(b_out, jnp.float32), (0, Op - O)).reshape(1, Op)

    return dict(w=w_fused, b=b_fused, w_out=w_out_t, b_out=b_out_p,
                dims=dict(L=L, D=D, H=H, O=O, Kp=Kp, Hp=Hp, Gp=Gp, Op=Op))


# ----------------------------------------------------------------------------
# Chip knobs & VMEM budgeting
# ----------------------------------------------------------------------------
def _tpu_knobs():
    """Chip-dependent knobs: (vmem_cap_bytes, batch_tile_cap, bf16_eup)."""
    try:
        kind = jax.devices()[0].device_kind.lower()
    except Exception:
        kind = ""
    is_v7 = "v7" in kind
    is_v6 = "v6" in kind
    # v7x: 64 MiB physical VMEM per TensorCore -> request at most ~56 MiB.
    # v5e/v6e: 128 MiB physical -> allow up to ~100 MiB.
    vmem_cap = (56 << 20) if is_v7 else (100 << 20)
    # v6e/v7x MXU is 2x256^2 (bf16): TB=256 fills the M dimension.
    # v5e's 4x128^2 MXU saturates at 128.
    tb_cap = 256 if (is_v6 or is_v7) else 128
    bf16_eup = is_v6 or is_v7          # bf16 EUP path only on v6e/v7x
    return vmem_cap, tb_cap, bf16_eup


def _vmem_bytes_estimate(TB, Kp, Hp, Gp, Op, L, weights_resident):
    f32, bf16 = 4, 2
    dbl = 2                                         # double-buffered blocks
    w_layer = (Kp + Hp) * Gp * bf16 + 1 * Gp * f32  # fused W + bias, one layer
    est = 0
    est += dbl * TB * Kp * f32                      # x0 block
    est += dbl * 2 * TB * Hp * f32                  # h0, c0 input blocks
    est += dbl * 2 * TB * Hp * f32                  # h1, c1 output blocks
    est += dbl * TB * Op * f32                      # output block
    est += dbl * (Hp * Op * bf16 + Op * f32)        # h2o weights + bias
    est += dbl * (L if weights_resident else 1) * w_layer
    est += TB * (Kp + Hp) * f32                     # [x | h] scratch
    est += TB * Gp * f32                            # gates scratch
    return est


# ----------------------------------------------------------------------------
# Forward wrapper
# ----------------------------------------------------------------------------
def stacked_lstm_forward(x, h0, c0, params, *, batch_tile=None,
                         weights_resident=None):
    """StackedLSTM forward.  x:(B,D)  h0,c0:(L,B,H)  ->  ((h1,c1), out:(B,O))."""
    d = params["dims"]
    L, D, H, O = d["L"], d["D"], d["H"], d["O"]
    Kp, Hp, Gp, Op = d["Kp"], d["Hp"], d["Gp"], d["Op"]
    B = x.shape[0]
    assert x.shape == (B, D)
    assert h0.shape == (L, B, H) and c0.shape == (L, B, H)

    vmem_cap, tb_cap, bf16_eup = _tpu_knobs()

    if batch_tile is None:
        # Multiple of 16 fills packed bf16 sublanes; cap is chip-dependent.
        # TODO(synk): on v7x with a single batch tile, split TB ~ Bp/2 so the
        #   second TensorCore is not idle.
        batch_tile = max(min(_round_up(B, 16), tb_cap), 16)
    TB = batch_tile
    Bp = _round_up(B, TB)

    headroom = 8 << 20
    if weights_resident is None:
        weights_resident = (_vmem_bytes_estimate(TB, Kp, Hp, Gp, Op, L, True)
                            + headroom <= vmem_cap)
    est = _vmem_bytes_estimate(TB, Kp, Hp, Gp, Op, L, weights_resident)
    vmem_limit = int(min(max(est + headroom, 32 << 20), vmem_cap))

    x_p = _pad_to(jnp.asarray(x, jnp.float32), (Bp, Kp))
    h0_p = _pad_to(jnp.asarray(h0, jnp.float32), (L, Bp, Hp))
    c0_p = _pad_to(jnp.asarray(c0, jnp.float32), (L, Bp, Hp))

    # Batch tiles parallel (megacore-shardable); layer carry MUST stay as the
    # last, sequentially executed ("arbitrary") axis for the VMEM carry.
    grid = (Bp // TB, L)
    assert grid[-1] == L

    if weights_resident:
        # Whole weight stack resident in VMEM: constant index map -> one DMA.
        w_spec = pl.BlockSpec((L, Kp + Hp, Gp), lambda b, l: (0, 0, 0))
        b_spec = pl.BlockSpec((L, 1, Gp), lambda b, l: (0, 0, 0))
    else:
        # Streamed per layer (re-fetched per batch tile).
        w_spec = pl.BlockSpec((1, Kp + Hp, Gp), lambda b, l: (l, 0, 0))
        b_spec = pl.BlockSpec((1, 1, Gp), lambda b, l: (l, 0, 0))

    grid_spec = pltpu.PrefetchScalarGridSpec(
        num_scalar_prefetch=0,
        grid=grid,
        in_specs=[
            pl.BlockSpec((TB, Kp), lambda b, l: (b, 0)),              # x0
            pl.BlockSpec((1, TB, Hp), lambda b, l: (l, b, 0)),        # h0
            pl.BlockSpec((1, TB, Hp), lambda b, l: (l, b, 0)),        # c0
            w_spec,                                                   # fused W
            b_spec,                                                   # fused bias
            pl.BlockSpec((Hp, Op), lambda b, l: (0, 0)),              # W_out^T
            pl.BlockSpec((1, Op), lambda b, l: (0, 0)),               # b_out
        ],
        out_specs=[
            pl.BlockSpec((1, TB, Hp), lambda b, l: (l, b, 0)),        # h1
            pl.BlockSpec((1, TB, Hp), lambda b, l: (l, b, 0)),        # c1
            pl.BlockSpec((TB, Op), lambda b, l: (b, 0)),              # output
        ],
        scratch_shapes=[
            pltpu.VMEM((TB, Kp + Hp), jnp.float32),                   # [x | h]
            pltpu.VMEM((TB, Gp), jnp.float32),                        # gates stage
        ],
    )

    kernel = functools.partial(_stacked_lstm_kernel,
                               weights_resident=weights_resident,
                               bf16_act=bf16_eup)

    h1, c1, out = pl.pallas_call(
        kernel,
        grid_spec=grid_spec,
        out_shape=(
            jax.ShapeDtypeStruct((L, Bp, Hp), jnp.float32),
            jax.ShapeDtypeStruct((L, Bp, Hp), jnp.float32),
            jax.ShapeDtypeStruct((Bp, Op), jnp.float32),
        ),
        compiler_params=pltpu.CompilerParams(
            dimension_semantics=("parallel", "arbitrary"),
            vmem_limit_bytes=vmem_limit),
    )(x_p, h0_p, c0_p, params["w"], params["b"], params["w_out"],
      params["b_out"])

    return (h1[:, :B, :H], c1[:, :B, :H]), out[:B, :O]


# ----------------------------------------------------------------------------
# Pure-JAX reference (f32 throughout) mirroring the PyTorch module
# ----------------------------------------------------------------------------
def _reference_forward(x, h0, c0, w_ih, w_hh, b_ih, b_hh, w_out, b_out):
    L, _, H = h0.shape
    h1, c1 = [], []
    for l in range(L):
        gates = x @ w_ih[l].T + b_ih[l] + h0[l] @ w_hh[l].T + b_hh[l]
        i_g = jax.nn.sigmoid(gates[:, 0 * H:1 * H])
        f_g = jax.nn.sigmoid(gates[:, 1 * H:2 * H])
        g_g = jnp.tanh(gates[:, 2 * H:3 * H])
        o_g = jax.nn.sigmoid(gates[:, 3 * H:4 * H])
        c_n = f_g * c0[l] + i_g * g_g
        h_n = o_g * jnp.tanh(c_n)
        x = h_n if l == 0 else x + h_n
        h1.append(h_n)
        c1.append(c_n)
    out = x @ w_out.T + b_out
    return (jnp.stack(h1), jnp.stack(c1)), out


if __name__ == "__main__":
    # num_layers=2, batch=8, input_size=48, rnn_size=32, output_size=16
    # (input_size != rnn_size exercises the general layer-0 path).
    L, B, D, H, O = 2, 8, 48, 32, 16
    key = jax.random.PRNGKey(0)
    keys = jax.random.split(key, 16)
    bound = 1.0 / jnp.sqrt(jnp.float32(H))

    x = jax.random.normal(keys[0], (B, D), dtype=jnp.float32)
    h0 = jax.random.normal(keys[1], (L, B, H), dtype=jnp.float32) * 0.1
    c0 = jax.random.normal(keys[2], (L, B, H), dtype=jnp.float32) * 0.1

    w_ih, w_hh, b_ih, b_hh = [], [], [], []
    for l in range(L):
        in_l = D if l == 0 else H
        w_ih.append(jax.random.uniform(keys[3 + l], (4 * H, in_l),
                                       jnp.float32, -bound, bound))
        w_hh.append(jax.random.uniform(keys[6 + l], (4 * H, H),
                                       jnp.float32, -bound, bound))
        b_ih.append(jax.random.uniform(keys[9 + l], (4 * H,),
                                       jnp.float32, -bound, bound))
        b_hh.append(jax.random.uniform(keys[12 + l], (4 * H,),
                                       jnp.float32, -bound, bound))
    w_out = jax.random.uniform(keys[14], (O, H), jnp.float32, -bound, bound)
    b_out = jax.random.uniform(keys[15], (O,), jnp.float32, -bound, bound)

    # One-time weight packing (transpose + fuse + pad + bf16 cast), hoisted
    # out of the per-call path.
    params = prepare_stacked_lstm_params(w_ih, w_hh, b_ih, b_hh, w_out, b_out)

    fwd = jax.jit(lambda x_, h_, c_: stacked_lstm_forward(x_, h_, c_, params))
    (h1, c1), out = fwd(x, h0, c0)
    jax.block_until_ready((h1, c1, out))

    (h1_ref, c1_ref), out_ref = _reference_forward(
        x, h0, c0, w_ih, w_hh, b_ih, b_hh, w_out, b_out)

    # bf16 matmul operands (+ bf16 transcendentals on v6e/v7x) with f32
    # accumulation / state -> loosened tolerance vs. the f32 reference.
    assert jnp.allclose(h1, h1_ref, atol=3e-2, rtol=3e-2)
    assert jnp.allclose(c1, c1_ref, atol=3e-2, rtol=3e-2)
    assert jnp.allclose(out, out_ref, atol=3e-2, rtol=3e-2)

    print("KERNEL_OK")
</pallas_src>

<mosaic_0001>
module attributes {stable_mosaic.version = 11 : i64} {
  func.func @_stacked_lstm_kernel(%arg0: i32, %arg1: i32, %arg2: memref<16x128xf32, #tpu.memory_space<vmem>>, %arg3: memref<1x16x128xf32, #tpu.memory_space<vmem>>, %arg4: memref<1x16x128xf32, #tpu.memory_space<vmem>>, %arg5: memref<2x256x512xbf16, #tpu.memory_space<vmem>>, %arg6: memref<2x1x512xf32, #tpu.memory_space<vmem>>, %arg7: memref<128x128xbf16, #tpu.memory_space<vmem>>, %arg8: memref<1x128xf32, #tpu.memory_space<vmem>>, %arg9: memref<1x16x128xf32, #tpu.memory_space<vmem>>, %arg10: memref<1x16x128xf32, #tpu.memory_space<vmem>>, %arg11: memref<16x128xf32, #tpu.memory_space<vmem>>, %arg12: memref<16x256xf32, #tpu.memory_space<vmem>>, %arg13: memref<16x512xf32, #tpu.memory_space<vmem>>) attributes {dimension_semantics = [#tpu.dimension_semantics<parallel>, #tpu.dimension_semantics<arbitrary>], iteration_bounds = array<i64: 1, 2>, scalar_prefetch = 0 : i64, scratch_operands = 2 : i64, tpu.core_type = #tpu.core_type<tc>, window_params = [{transform_indices = @transform_0, window_bounds = array<i64: 16, 128>}, {transform_indices = @transform_1, window_bounds = array<i64: 1, 16, 128>}, {transform_indices = @transform_2, window_bounds = array<i64: 1, 16, 128>}, {pipeline_mode = #tpu.pipeline_mode<synchronous>, transform_indices = @transform_3, window_bounds = array<i64: 2, 256, 512>}, {pipeline_mode = #tpu.pipeline_mode<synchronous>, transform_indices = @transform_4, window_bounds = array<i64: 2, 1, 512>}, {pipeline_mode = #tpu.pipeline_mode<synchronous>, transform_indices = @transform_5, window_bounds = array<i64: 128, 128>}, {pipeline_mode = #tpu.pipeline_mode<synchronous>, transform_indices = @transform_6, window_bounds = array<i64: 1, 128>}, {transform_indices = @transform_7, window_bounds = array<i64: 1, 16, 128>}, {transform_indices = @transform_8, window_bounds = array<i64: 1, 16, 128>}, {transform_indices = @transform_9, window_bounds = array<i64: 16, 128>}]} {
    %c0_i32 = arith.constant 0 : i32
    %0 = arith.cmpi eq, %arg1, %c0_i32 : i32
    %1 = arith.extui %0 : i1 to i32
    %c0_i32_0 = arith.constant 0 : i32
    %2 = arith.cmpi ne, %1, %c0_i32_0 : i32
    scf.if %2 {
      %c0_42 = arith.constant 0 : index
      %c0_43 = arith.constant 0 : index
      %65 = vector.load %arg2[%c0_42, %c0_43] : memref<16x128xf32, #tpu.memory_space<vmem>>, vector<16x128xf32>
      %c0_44 = arith.constant 0 : index
      %c0_45 = arith.constant 0 : index
      %66 = vector.load %arg12[%c0_44, %c0_45] : memref<16x256xf32, #tpu.memory_space<vmem>>, vector<16x128xf32>
      tpu.vector_store %arg12[%c0_44, %c0_45], %65 {strides = array<i32>} : memref<16x256xf32, #tpu.memory_space<vmem>>, vector<16x128xf32>,
    } else {
    }
    %c0 = arith.constant 0 : index
    %c0_1 = arith.constant 0 : index
    %c0_2 = arith.constant 0 : index
    %3 = vector.load %arg3[%c0, %c0_1, %c0_2] : memref<1x16x128xf32, #tpu.memory_space<vmem>>, vector<1x16x128xf32>
    %4 = vector.shape_cast %3 : vector<1x16x128xf32> to vector<16x128xf32>
    %c0_3 = arith.constant 0 : index
    %c0_4 = arith.constant 0 : index
    %c0_5 = arith.constant 0 : index
    %5 = vector.load %arg4[%c0_3, %c0_4, %c0_5] : memref<1x16x128xf32, #tpu.memory_space<vmem>>, vector<1x16x128xf32>
    %6 = vector.shape_cast %5 : vector<1x16x128xf32> to vector<16x128xf32>
    %c0_6 = arith.constant 0 : index
    %c128 = arith.constant 128 : index
    %7 = vector.load %arg12[%c0_6, %c128] : memref<16x256xf32, #tpu.memory_space<vmem>>, vector<16x128xf32>
    tpu.vector_store %arg12[%c0_6, %c128], %4 {strides = array<i32>} : memref<16x256xf32, #tpu.memory_space<vmem>>, vector<16x128xf32>,
    %8 = arith.index_cast %arg1 : i32 to index
    %c0_7 = arith.constant 0 : index
    %c0_8 = arith.constant 0 : index
    %9 = vector.load %arg5[%8, %c0_7, %c0_8] : memref<2x256x512xbf16, #tpu.memory_space<vmem>>, vector<1x256x512xbf16>
    %10 = vector.shape_cast %9 : vector<1x256x512xbf16> to vector<256x512xbf16>
    %11 = arith.index_cast %arg1 : i32 to index
    %c0_9 = arith.constant 0 : index
    %c0_10 = arith.constant 0 : index
    %12 = vector.load %arg6[%11, %c0_9, %c0_10] : memref<2x1x512xf32, #tpu.memory_space<vmem>>, vector<1x1x512xf32>
    %13 = vector.shape_cast %12 : vector<1x1x512xf32> to vector<1x512xf32>
    %c0_11 = arith.constant 0 : index
    %c0_12 = arith.constant 0 : index
    %14 = vector.load %arg12[%c0_11, %c0_12] : memref<16x256xf32, #tpu.memory_space<vmem>>, vector<16x256xf32>
    %15 = arith.truncf %14 : vector<16x256xf32> to vector<16x256xbf16>
    %cst = arith.constant dense<0.000000e+00> : vector<16x512xf32>
    %16 = tpu.matmul %15, %10, %cst {dimension_numbers = #tpu.dot_dimension_numbers<[1], [0], [0], [1], [0, 0, 1, 1], [], []>} : vector<16x256xbf16>, vector<256x512xbf16>, vector<16x512xf32> -> vector<16x512xf32>
    %17 = vector.broadcast %13 : vector<1x512xf32> to vector<16x512xf32>
    %18 = arith.addf %16, %17 : vector<16x512xf32>
    %c0_13 = arith.constant 0 : index
    %c0_14 = arith.constant 0 : index
    %19 = vector.load %arg13[%c0_13, %c0_14] : memref<16x512xf32, #tpu.memory_space<vmem>>, vector<16x512xf32>
    tpu.vector_store %arg13[%c0_13, %c0_14], %18 {strides = array<i32>} : memref<16x512xf32, #tpu.memory_space<vmem>>, vector<16x512xf32>,
    %c0_15 = arith.constant 0 : index
    %c0_16 = arith.constant 0 : index
    %20 = vector.load %arg13[%c0_15, %c0_16] : memref<16x512xf32, #tpu.memory_space<vmem>>, vector<16x128xf32>
    %cst_17 = arith.constant 5.000000e-01 : f32
    %21 = vector.broadcast %cst_17 : f32 to vector<16x128xf32>
    %22 = arith.mulf %21, %20 : vector<16x128xf32>
    %23 = math.tanh %22 : vector<16x128xf32>
    %cst_18 = arith.constant 5.000000e-01 : f32
    %24 = vector.broadcast %cst_18 : f32 to vector<16x128xf32>
    %25 = arith.mulf %24, %23 : vector<16x128xf32>
    %cst_19 = arith.constant 5.000000e-01 : f32
    %26 = vector.broadcast %cst_19 : f32 to vector<16x128xf32>
    %27 = arith.addf %25, %26 : vector<16x128xf32>
    %c0_20 = arith.constant 0 : index
    %c128_21 = arith.constant 128 : index
    %28 = vector.load %arg13[%c0_20, %c128_21] : memref<16x512xf32, #tpu.memory_space<vmem>>, vector<16x128xf32>
    %cst_22 = arith.constant 5.000000e-01 : f32
    %29 = vector.broadcast %cst_22 : f32 to vector<16x128xf32>
    %30 = arith.mulf %29, %28 : vector<16x128xf32>
    %31 = math.tanh %30 : vector<16x128xf32>
    %cst_23 = arith.constant 5.000000e-01 : f32
    %32 = vector.broadcast %cst_23 : f32 to vector<16x128xf32>
    %33 = arith.mulf %32, %31 : vector<16x128xf32>
    %cst_24 = arith.constant 5.000000e-01 : f32
    %34 = vector.broadcast %cst_24 : f32 to vector<16x128xf32>
    %35 = arith.addf %33, %34 : vector<16x128xf32>
    %c0_25 = arith.constant 0 : index
    %c256 = arith.constant 256 : index
    %36 = vector.load %arg13[%c0_25, %c256] : memref<16x512xf32, #tpu.memory_space<vmem>>, vector<16x128xf32>
    %37 = math.tanh %36 : vector<16x128xf32>
    %c0_26 = arith.constant 0 : index
    %c384 = arith.constant 384 : index
    %38 = vector.load %arg13[%c0_26, %c384] : memref<16x512xf32, #tpu.memory_space<vmem>>, vector<16x128xf32>
    %cst_27 = arith.constant 5.000000e-01 : f32
    %39 = vector.broadcast %cst_27 : f32 to vector<16x128xf32>
    %40 = arith.mulf %39, %38 : vector<16x128xf32>
    %41 = math.tanh %40 : vector<16x128xf32>
    %cst_28 = arith.constant 5.000000e-01 : f32
    %42 = vector.broadcast %cst_28 : f32 to vector<16x128xf32>
    %43 = arith.mulf %42, %41 : vector<16x128xf32>
    %cst_29 = arith.constant 5.000000e-01 : f32
    %44 = vector.broadcast %cst_29 : f32 to vector<16x128xf32>
    %45 = arith.addf %43, %44 : vector<16x128xf32>
    %46 = arith.mulf %35, %6 : vector<16x128xf32>
    %47 = arith.mulf %27, %37 : vector<16x128xf32>
    %48 = arith.addf %46, %47 : vector<16x128xf32>
    %49 = math.tanh %48 : vector<16x128xf32>
    %50 = arith.mulf %45, %49 : vector<16x128xf32>
    %c0_30 = arith.constant 0 : index
    %c0_31 = arith.constant 0 : index
    %c0_32 = arith.constant 0 : index
    %51 = vector.load %arg9[%c0_30, %c0_31, %c0_32] : memref<1x16x128xf32, #tpu.memory_space<vmem>>, vector<1x16x128xf32>
    %52 = vector.shape_cast %51 : vector<1x16x128xf32> to vector<16x128xf32>
    %53 = vector.shape_cast %50 : vector<16x128xf32> to vector<1x16x128xf32>
    tpu.vector_store %arg9[%c0_30, %c0_31, %c0_32], %53 {strides = array<i32>} : memref<1x16x128xf32, #tpu.memory_space<vmem>>, vector<1x16x128xf32>,
    %c0_33 = arith.constant 0 : index
    %c0_34 = arith.constant 0 : index
    %c0_35 = arith.constant 0 : index
    %54 = vector.load %arg10[%c0_33, %c0_34, %c0_35] : memref<1x16x128xf32, #tpu.memory_space<vmem>>, vector<1x16x128xf32>
    %55 = vector.shape_cast %54 : vector<1x16x128xf32> to vector<16x128xf32>
    %56 = vector.shape_cast %48 : vector<16x128xf32> to vector<1x16x128xf32>
    tpu.vector_store %arg10[%c0_33, %c0_34, %c0_35], %56 {strides = array<i32>} : memref<1x16x128xf32, #tpu.memory_space<vmem>>, vector<1x16x128xf32>,
    %c0_36 = arith.constant 0 : index
    %c0_37 = arith.constant 0 : index
    %57 = vector.load %arg12[%c0_36, %c0_37] : memref<16x256xf32, #tpu.memory_space<vmem>>, vector<16x128xf32>
    %c0_i32_38 = arith.constant 0 : i32
    %58 = arith.cmpi eq, %arg1, %c0_i32_38 : i32
    %59 = arith.addf %57, %50 : vector<16x128xf32>
    %60 = arith.select %58, %50, %59 : vector<16x128xf32>
    %c0_39 = arith.constant 0 : index
    %c0_40 = arith.constant 0 : index
    %61 = vector.load %arg12[%c0_39, %c0_40] : memref<16x256xf32, #tpu.memory_space<vmem>>, vector<16x128xf32>
    tpu.vector_store %arg12[%c0_39, %c0_40], %60 {strides = array<i32>} : memref<16x256xf32, #tpu.memory_space<vmem>>, vector<16x128xf32>,
    %c1_i32 = arith.constant 1 : i32
    %62 = arith.cmpi eq, %arg1, %c1_i32 : i32
    %63 = arith.extui %62 : i1 to i32
    %c0_i32_41 = arith.constant 0 : i32
    %64 = arith.cmpi ne, %63, %c0_i32_41 : i32
    scf.if %64 {
      %65 = arith.truncf %60 : vector<16x128xf32> to vector<16x128xbf16>
      %c0_42 = arith.constant 0 : index
      %c0_43 = arith.constant 0 : index
      %66 = vector.load %arg7[%c0_42, %c0_43] : memref<128x128xbf16, #tpu.memory_space<vmem>>, vector<128x128xbf16>
      %cst_44 = arith.constant dense<0.000000e+00> : vector<16x128xf32>
      %67 = tpu.matmul %65, %66, %cst_44 {dimension_numbers = #tpu.dot_dimension_numbers<[1], [0], [0], [1], [0, 0, 1, 1], [], []>} : vector<16x128xbf16>, vector<128x128xbf16>, vector<16x128xf32> -> vector<16x128xf32>
      %c0_45 = arith.constant 0 : index
      %c0_46 = arith.constant 0 : index
      %68 = vector.load %arg8[%c0_45, %c0_46] : memref<1x128xf32, #tpu.memory_space<vmem>>, vector<1x128xf32>
      %69 = vector.broadcast %68 : vector<1x128xf32> to vector<16x128xf32>
      %70 = arith.addf %67, %69 : vector<16x128xf32>
      %c0_47 = arith.constant 0 : index
      %c0_48 = arith.constant 0 : index
      %71 = vector.load %arg11[%c0_47, %c0_48] : memref<16x128xf32, #tpu.memory_space<vmem>>, vector<16x128xf32>
      tpu.vector_store %arg11[%c0_47, %c0_48], %70 {strides = array<i32>} : memref<16x128xf32, #tpu.memory_space<vmem>>, vector<16x128xf32>,
    } else {
    }
    return
  }
  func.func @transform_0(%arg0: i32, %arg1: i32) -> (i32, i32) {
    %c0_i32 = arith.constant 0 : i32
    %c0_i32_0 = arith.constant 0 : i32
    return %arg0, %c0_i32 : i32, i32
  }
  func.func @transform_1(%arg0: i32, %arg1: i32) -> (i32, i32, i32) {
    %c0_i32 = arith.constant 0 : i32
    %c0_i32_0 = arith.constant 0 : i32
    return %arg1, %arg0, %c0_i32 : i32, i32, i32
  }
  func.func @transform_2(%arg0: i32, %arg1: i32) -> (i32, i32, i32) {
    %c0_i32 = arith.constant 0 : i32
    %c0_i32_0 = arith.constant 0 : i32
    return %arg1, %arg0, %c0_i32 : i32, i32, i32
  }
  func.func @transform_3(%arg0: i32, %arg1: i32) -> (i32, i32, i32) {
    %c0_i32 = arith.constant 0 : i32
    %c0_i32_0 = arith.constant 0 : i32
    %c0_i32_1 = arith.constant 0 : i32
    %c0_i32_2 = arith.constant 0 : i32
    return %c0_i32, %c0_i32_0, %c0_i32_1 : i32, i32, i32
  }
  func.func @transform_4(%arg0: i32, %arg1: i32) -> (i32, i32, i32) {
    %c0_i32 = arith.constant 0 : i32
    %c0_i32_0 = arith.constant 0 : i32
    %c0_i32_1 = arith.constant 0 : i32
    %c0_i32_2 = arith.constant 0 : i32
    return %c0_i32, %c0_i32_0, %c0_i32_1 : i32, i32, i32
  }
  func.func @transform_5(%arg0: i32, %arg1: i32) -> (i32, i32) {
    %c0_i32 = arith.constant 0 : i32
    %c0_i32_0 = arith.constant 0 : i32
    %c0_i32_1 = arith.constant 0 : i32
    return %c0_i32, %c0_i32_0 : i32, i32
  }
  func.func @transform_6(%arg0: i32, %arg1: i32) -> (i32, i32) {
    %c0_i32 = arith.constant 0 : i32
    %c0_i32_0 = arith.constant 0 : i32
    %c0_i32_1 = arith.constant 0 : i32
    return %c0_i32, %c0_i32_0 : i32, i32
  }
  func.func @transform_7(%arg0: i32, %arg1: i32) -> (i32, i32, i32) {
    %c0_i32 = arith.constant 0 : i32
    %c0_i32_0 = arith.constant 0 : i32
    return %arg1, %arg0, %c0_i32 : i32, i32, i32
  }
  func.func @transform_8(%arg0: i32, %arg1: i32) -> (i32, i32, i32) {
    %c0_i32 = arith.constant 0 : i32
    %c0_i32_0 = arith.constant 0 : i32
    return %arg1, %arg0, %c0_i32 : i32, i32, i32
  }
  func.func @transform_9(%arg0: i32, %arg1: i32) -> (i32, i32) {
    %c0_i32 = arith.constant 0 : i32
    %c0_i32_0 = arith.constant 0 : i32
    return %arg0, %c0_i32 : i32, i32
  }
}

</mosaic_0001>

<bundles_post_ra>
// kernel: _lambda_.1
= control target key start
LH: loop header
LB: loop body
LE: loop exit
PB: predicated region body
PF: predicated region fallthrough
CT: control target
= control target key end

     0   :  { %s1732_s30 = smov 0   ;;  %s1734_s10 = smov 0   ;;  %s1913_s0 = inlined_call_operand.vmem [shape: f32[16,128], index: 0, kind: input, shape index: {}]   ;;  %s1914_s1 = inlined_call_operand.vmem [shape: f32[2,16,128], index: 1, kind: input, shape index: {}]   ;;  %s1915_s2 = inlined_call_operand.vmem [shape: f32[2,16,128], index: 2, kind: input, shape index: {}]   ;;  %s1916_s3 = inlined_call_operand.vmem [shape: bf16[2,256,512], index: 3, kind: input, shape index: {}]   ;;  %s1917_s4 = inlined_call_operand.vmem [shape: f32[2,1,512], index: 4, kind: input, shape index: {}]   ;;  %s1918_s5 = inlined_call_operand.vmem [shape: bf16[128,128], index: 5, kind: input, shape index: {}]   ;;  %s1919_s6 = inlined_call_operand.vmem [shape: f32[1,128], index: 6, kind: input, shape index: {}]   ;;  %s1920_s7 = inlined_call_operand.vmem [shape: f32[2,16,128], index: 7, kind: output, shape index: {0}]   ;;  %s1921_s8 = inlined_call_operand.vmem [shape: f32[2,16,128], index: 8, kind: output, shape index: {1}]   ;;  %s1922_s9 = inlined_call_operand.vmem [shape: f32[16,128], index: 9, kind: output, shape index: {2}]  }
   0x1   :  { %s1736_s11 = smov 0  }
   0x2 LB: > { %s29_s12 = sadd.s32 1, %s1674_s10  ;;  %p1381_p0 = scmp.ge.s32.totalorder %s1678_s11, 1  ;;  %s1678_s11 = sphi %s1736_s11, %s20_s11   ;;  %s1674_s10 = sphi %s1734_s10, %s1924_s10   ;;  %s1670_s30 = sphi %s1732_s30, %s1923_s30  }
   0x3   : > { %p30_p1 = scmp.ge.s32.totalorder %s29_s12, 2  ;;  %p343_p2 = scmp.lt.s32.totalorder %s1678_s11, 3 }
   0x5   : > { %s1926_s12 = smov (%p30_p1, %s29_s12), 0  ;;  %p344_p3 = pnand %p1381_p0, %p343_p2 }
   0x6   : > { %p422_p4 = scmp.lt.s32.totalorder (!%p344_p3), %s1670_s30, 1  ;;  %p468_p5 = scmp.eq.s32.totalorder (!%p344_p3), %s1670_s30, 0 }
   0x7   : > { %347 = sbr.rel (%p344_p3) target bundleno = 584 (0x248), region = 48  ;;  %p1390_p6 = scmp.ne.s32.totalorder (!%p344_p3), %s1670_s30, 0 }
   0xe   : > { %s423_s13 = scalar_select %p422_p4, %s1670_s30, 1 }
   0xf   : > { %471 = sbr.rel (%p1390_p6) target bundleno = 22 (0x16), region = 52  ;;  %v472_v0 = vld [vmem:[%s1913_s0] sm:$0xff] (!%p1390_p6)  ;;  %v473_v1 = vld [vmem:[%s1913_s0 + $0x8] sm:$0xff] (!%p1390_p6) }
  0x10   : > { %s1472_s14 = sshll.u32 %s423_s13, 4  ;;  %474 = vst [vmem:[#allocation2] sm:$0xff] (!%p1390_p6), %v472_v0  ;;  %475 = vst [vmem:[#allocation2 + $0x10] sm:$0xff] (!%p1390_p6), %v473_v1 }
  0x11   : > { %s429_s17 = scalar_lea.vmem %s1914_s1, %s1472_s14  ;;  %s1761_s20 = scalar_lea.vmem %s1915_s2, %s1472_s14 }
  0x12   : > { %s1766_s23 = scalar_lea.vmem %s1920_s7, %s1472_s14  ;;  %s1771_s26 = scalar_lea.vmem %s1921_s8, %s1472_s14 }
  0x16 PF: > { %s1476_s15 = sshll.u32 %s1670_s30, 9  ;;  %v476_v2 = vld [vmem:[%s429_s17] sm:$0xff]  ;;  %v477_v3 = vld [vmem:[%s429_s17 + $0x8] sm:$0xff]  ;;  %s1393_s17 = sshll.u32 %s1670_s30, 2 }
  0x17   : > { %s1784_s18 = scalar_lea.vmem %s1916_s3, %s1476_s15  ;;  %v557_v4 = vpack.c.bf16 %v477_v3, %v476_v2  ;;  %v1847_v2 = vld [vmem:[#allocation2] sm:$0xff]  ;;  %s550_s22 = scalar_lea.vmem %s1917_s4, %s1393_s17 }
  0x18   : > { %v1532_v5 = vld [vmem:[%s1784_s18 + $0x4] ss:$16 sps:$4 sm:$0xff]   ;;  %v1534_v6 = vld [vmem:[%s1784_s18] ss:$16 sps:$4 sm:$0xff]   ;;  %v1537_v8 = vld [vmem:[%s1784_s18 + $0xc] ss:$16 sps:$4 sm:$0xff]  }
  0x19   : > { %931 = vmatprep.mubr.bf16.mxu0 %v557_v4  ;;  %974 = vmatprep.mubr.bf16.mxu1 %v557_v4  ;;  %v1535_v7 = vld [vmem:[%s1784_s18 + $0x24] ss:$16 sps:$4 sm:$0xff]   ;;  %v1539_v9 = vld [vmem:[%s1784_s18 + $0x20] ss:$16 sps:$4 sm:$0xff]   ;;  %v1540_v10 = vld [vmem:[%s1784_s18 + $0x8] ss:$16 sps:$4 sm:$0xff]  }
  0x1a   : > { %899 = vmatprep.subr.bf16.mxu0 %v1532_v5  ;;  %v1541_v11 = vld [vmem:[%s1784_s18 + $0x44] ss:$16 sps:$4 sm:$0xff]   ;;  %942 = vmatprep.subr.bf16.mxu1 %v1537_v8  ;;  %v1543_v12 = vld [vmem:[%s1784_s18 + $0x2c] ss:$16 sps:$4 sm:$0xff]   ;;  %v1546_v13 = vld [vmem:[%s1784_s18 + $0x28] ss:$16 sps:$4 sm:$0xff]   ;;  %v559_v8 = vlaneseq }
  0x1b   : > { %900 = vmatpush1.bf16.msra.mxu0 %v1534_v6  ;;  %943 = vmatpush1.bf16.msra.mxu1 %v1540_v10  ;;  %v1545_v14 = vld [vmem:[%s1784_s18 + $0x40] ss:$16 sps:$4 sm:$0xff]   ;;  %v1547_v15 = vld [vmem:[%s1784_s18 + $0x64] ss:$16 sps:$4 sm:$0xff]   ;;  %v1549_v16 = vld [vmem:[%s1784_s18 + $0x4c] ss:$16 sps:$4 sm:$0xff]  }
  0x1c   : > { %901 = vmatprep.subr.bf16.mxu0 %v1535_v7  ;;  %944 = vmatprep.subr.bf16.mxu1 %v1543_v12  ;;  %v1552_v17 = vld [vmem:[%s1784_s18 + $0x48] ss:$16 sps:$4 sm:$0xff]   ;;  %v1551_v18 = vld [vmem:[%s1784_s18 + $0x60] ss:$16 sps:$4 sm:$0xff]   ;;  %v1555_v19 = vld [vmem:[%s1784_s18 + $0x6c] ss:$16 sps:$4 sm:$0xff]  }
  0x1d   : > { %v1553_v20 = vld [vmem:[%s1784_s18 + $0x84] ss:$16 sps:$4 sm:$0xff]   ;;  %v1557_v21 = vld [vmem:[%s1784_s18 + $0x80] ss:$16 sps:$4 sm:$0xff]   ;;  %v1558_v22 = vld [vmem:[%s1784_s18 + $0x68] ss:$16 sps:$4 sm:$0xff]  }
  0x1e   : > { %v1561_v23 = vld [vmem:[%s1784_s18 + $0x8c] ss:$16 sps:$4 sm:$0xff]   ;;  %v1559_v24 = vld [vmem:[%s1784_s18 + $0xa4] ss:$16 sps:$4 sm:$0xff]   ;;  %v1564_v25 = vld [vmem:[%s1784_s18 + $0x88] ss:$16 sps:$4 sm:$0xff]  }
  0x1f   : > { %902 = vmatpush1.bf16.msra.mxu0 %v1539_v9  ;;  %945 = vmatpush1.bf16.msra.mxu1 %v1546_v13  ;;  %v1563_v26 = vld [vmem:[%s1784_s18 + $0xa0] ss:$16 sps:$4 sm:$0xff]   ;;  %v1567_v27 = vld [vmem:[%s1784_s18 + $0xac] ss:$16 sps:$4 sm:$0xff]   ;;  %v1565_v28 = vld [vmem:[%s1784_s18 + $0xc4] ss:$16 sps:$4 sm:$0xff]  }
  0x20   : > { %903 = vmatprep.subr.bf16.mxu0 %v1541_v11  ;;  %946 = vmatprep.subr.bf16.mxu1 %v1549_v16  ;;  %v1569_v29 = vld [vmem:[%s1784_s18 + $0xc0] ss:$16 sps:$4 sm:$0xff]   ;;  %v1570_v30 = vld [vmem:[%s1784_s18 + $0xa8] ss:$16 sps:$4 sm:$0xff]   ;;  %v1573_v31 = vld [vmem:[%s1784_s18 + $0xcc] ss:$16 sps:$4 sm:$0xff]  }
  0x21   : > { %v1571_v32 = vld [vmem:[%s1784_s18 + $0xe4] ss:$16 sps:$4 sm:$0xff]   ;;  %v1576_v33 = vld [vmem:[%s1784_s18 + $0xc8] ss:$16 sps:$4 sm:$0xff]   ;;  %v1575_v34 = vld [vmem:[%s1784_s18 + $0xe0] ss:$16 sps:$4 sm:$0xff]  }
  0x22   : > { %v1579_v35 = vld [vmem:[%s1784_s18 + $0xec] ss:$16 sps:$4 sm:$0xff]   ;;  %v1577_v36 = vld [vmem:[%s1784_s18 + $0x104] ss:$16 sps:$4 sm:$0xff]   ;;  %v1581_v37 = vld [vmem:[%s1784_s18 + $0x100] ss:$16 sps:$4 sm:$0xff]  }
  0x23   : > { %904 = vmatpush1.bf16.msra.mxu0 %v1545_v14  ;;  %947 = vmatpush1.bf16.msra.mxu1 %v1552_v17  ;;  %v1582_v38 = vld [vmem:[%s1784_s18 + $0xe8] ss:$16 sps:$4 sm:$0xff]   ;;  %v1585_v39 = vld [vmem:[%s1784_s18 + $0x10c] ss:$16 sps:$4 sm:$0xff]   ;;  %v1583_v40 = vld [vmem:[%s1784_s18 + $0x124] ss:$16 sps:$4 sm:$0xff]  }
  0x24   : > { %905 = vmatprep.subr.bf16.mxu0 %v1547_v15  ;;  %948 = vmatprep.subr.bf16.mxu1 %v1555_v19  ;;  %v1588_v41 = vld [vmem:[%s1784_s18 + $0x108] ss:$16 sps:$4 sm:$0xff]   ;;  %v1587_v42 = vld [vmem:[%s1784_s18 + $0x120] ss:$16 sps:$4 sm:$0xff]   ;;  %v1591_v43 = vld [vmem:[%s1784_s18 + $0x12c] ss:$16 sps:$4 sm:$0xff]  }
  0x25   : > { %v1589_v44 = vld [vmem:[%s1784_s18 + $0x144] ss:$16 sps:$4 sm:$0xff]   ;;  %v1593_v45 = vld [vmem:[%s1784_s18 + $0x140] ss:$16 sps:$4 sm:$0xff]   ;;  %v1594_v46 = vld [vmem:[%s1784_s18 + $0x128] ss:$16 sps:$4 sm:$0xff]  }
  0x26   : > { %v1597_v47 = vld [vmem:[%s1784_s18 + $0x14c] ss:$16 sps:$4 sm:$0xff]   ;;  %v1595_v48 = vld [vmem:[%s1784_s18 + $0x164] ss:$16 sps:$4 sm:$0xff]   ;;  %v1600_v49 = vld [vmem:[%s1784_s18 + $0x148] ss:$16 sps:$4 sm:$0xff]  }
  0x27   : > { %906 = vmatpush1.bf16.msra.mxu0 %v1551_v18  ;;  %949 = vmatpush1.bf16.msra.mxu1 %v1558_v22  ;;  %v1599_v50 = vld [vmem:[%s1784_s18 + $0x160] ss:$16 sps:$4 sm:$0xff]   ;;  %v1603_v51 = vld [vmem:[%s1784_s18 + $0x16c] ss:$16 sps:$4 sm:$0xff]   ;;  %v1601_v52 = vld [vmem:[%s1784_s18 + $0x184] ss:$16 sps:$4 sm:$0xff]  }
  0x28   : > { %907 = vmatprep.subr.bf16.mxu0 %v1553_v20  ;;  %950 = vmatprep.subr.bf16.mxu1 %v1561_v23  ;;  %v1606_v53 = vld [vmem:[%s1784_s18 + $0x168] ss:$16 sps:$4 sm:$0xff]   ;;  %v1605_v54 = vld [vmem:[%s1784_s18 + $0x180] ss:$16 sps:$4 sm:$0xff]   ;;  %v1609_v55 = vld [vmem:[%s1784_s18 + $0x18c] ss:$16 sps:$4 sm:$0xff]  }
  0x29   : > { %v1607_v56 = vld [vmem:[%s1784_s18 + $0x1a4] ss:$16 sps:$4 sm:$0xff]   ;;  %v1612_v57 = vld [vmem:[%s1784_s18 + $0x188] ss:$16 sps:$4 sm:$0xff]   ;;  %v1611_v58 = vld [vmem:[%s1784_s18 + $0x1a0] ss:$16 sps:$4 sm:$0xff]  }
  0x2a   : > { %v1615_v59 = vld [vmem:[%s1784_s18 + $0x1ac] ss:$16 sps:$4 sm:$0xff]   ;;  %v1613_v60 = vld [vmem:[%s1784_s18 + $0x1c4] ss:$16 sps:$4 sm:$0xff]   ;;  %v1618_v61 = vld [vmem:[%s1784_s18 + $0x1a8] ss:$16 sps:$4 sm:$0xff]  }
  0x2b   : > { %908 = vmatpush1.bf16.msra.mxu0 %v1557_v21  ;;  %951 = vmatpush1.bf16.msra.mxu1 %v1564_v25  ;;  %v1617_v62 = vld [vmem:[%s1784_s18 + $0x1c0] ss:$16 sps:$4 sm:$0xff]   ;;  %v1621_v63 = vld [vmem:[%s1784_s18 + $0x1cc] ss:$16 sps:$4 sm:$0xff]   ;;  %v1619_v0 = vld [vmem:[%s1784_s18 + $0x1e4] ss:$16 sps:$4 sm:$0xff]  }
  0x2c   : > { %909 = vmatprep.subr.bf16.mxu0 %v1559_v24  ;;  %952 = vmatprep.subr.bf16.mxu1 %v1567_v27  ;;  %v1624_v1 = vld [vmem:[%s1784_s18 + $0x1c8] ss:$16 sps:$4 sm:$0xff]   ;;  %v1623_v3 = vld [vmem:[%s1784_s18 + $0x1e0] ss:$16 sps:$4 sm:$0xff]   ;;  %v1625_v5 = vld [vmem:[%s1784_s18 + $0x1ec] ss:$16 sps:$4 sm:$0xff]  }
  0x2d   : > { %v1850_v4 = vld [vmem:[#allocation2 + $0x10] sm:$0xff]  ;;  %v1627_v7 = vld [vmem:[%s1784_s18 + $0x1e8] ss:$16 sps:$4 sm:$0xff]   ;;  %v560_v9 = vshrl.u32 %v559_v8, 7  ;;  %v551_v11 = vld [vmem:[%s550_s22] sm:$0xf] }
  0x2e   : > { %v556_v6 = vpack.c.bf16 %v1850_v4, %v1847_v2  ;;  %p1458_p7 = scmp.ne.s32.totalorder %s1670_s30, 1 }
  0x2f   : > { %910 = vmatpush1.bf16.msra.mxu0 %v1563_v26  ;;  %953 = vmatpush1.bf16.msra.mxu1 %v1570_v30  ;;  %v561_v10 = vsub.s32 0, %v560_v9  ;;  %v565_v12 = vsub.s32 1, %v560_v9  ;;  %v569_v14 = vsub.s32 2, %v560_v9  ;;  %v573_v20 = vsub.s32 3, %v560_v9 }
  0x30   : > { %911 = vmatprep.subr.bf16.mxu0 %v1565_v28  ;;  %954 = vmatprep.subr.bf16.mxu1 %v1573_v31  ;;  %vm1681_vm1 = vmmov (!%p1458_p7), 0  }
  0x31   : > { %v562_v13 = vrot.slane %v551_v11, %v561_v10  ;;  %v566_v15 = vrot.slane %v551_v11, %v565_v12  ;;  %v570_v19 = vrot.slane %v551_v11, %v569_v14 }
  0x33   : > { %912 = vmatpush1.bf16.msra.mxu0 %v1569_v29  ;;  %955 = vmatpush1.bf16.msra.mxu1 %v1576_v33 }
  0x34   : > { %913 = vmatprep.subr.bf16.mxu0 %v1571_v32  ;;  %956 = vmatprep.subr.bf16.mxu1 %v1579_v35  ;;  %v574_v32 = vrot.slane %v551_v11, %v573_v20  ;;  %v1653_v20 = vld [vmem:[%s1918_s5 + $0x28] sm:$0xff] (!%p1458_p7)  }
  0x37   : > { %914 = vmatpush1.bf16.msra.mxu0 %v1575_v34  ;;  %957 = vmatpush1.bf16.msra.mxu1 %v1582_v38 }
  0x38   : > { %915 = vmatprep.subr.bf16.mxu0 %v1577_v36  ;;  %958 = vmatprep.subr.bf16.mxu1 %v1585_v39 }
  0x3b   : > { %916 = vmatpush1.bf16.msra.mxu0 %v1581_v37  ;;  %959 = vmatpush1.bf16.msra.mxu1 %v1588_v41 }
  0x3c   : > { %917 = vmatprep.subr.bf16.mxu0 %v1583_v40  ;;  %960 = vmatprep.subr.bf16.mxu1 %v1591_v43 }
  0x3f   : > { %918 = vmatpush1.bf16.msra.mxu0 %v1587_v42  ;;  %961 = vmatpush1.bf16.msra.mxu1 %v1594_v46 }
  0x40   : > { %919 = vmatprep.subr.bf16.mxu0 %v1589_v44  ;;  %962 = vmatprep.subr.bf16.mxu1 %v1597_v47 }
  0x43   : > { %920 = vmatpush1.bf16.msra.mxu0 %v1593_v45  ;;  %963 = vmatpush1.bf16.msra.mxu1 %v1600_v49 }
  0x44   : > { %921 = vmatprep.subr.bf16.mxu0 %v1595_v48  ;;  %964 = vmatprep.subr.bf16.mxu1 %v1603_v51  ;;  %v478_v48 = vld [vmem:[%s1761_s20] sm:$0xff] }
  0x47   : > { %922 = vmatpush1.bf16.msra.mxu0 %v1599_v50  ;;  %965 = vmatpush1.bf16.msra.mxu1 %v1606_v53 }
  0x48   : > { %923 = vmatprep.subr.bf16.mxu0 %v1601_v52  ;;  %966 = vmatprep.subr.bf16.mxu1 %v1609_v55 }
  0x4b   : > { %924 = vmatpush1.bf16.msra.mxu0 %v1605_v54  ;;  %967 = vmatpush1.bf16.msra.mxu1 %v1612_v57  ;;  %v479_v54 = vld [vmem:[%s1761_s20 + $0x8] sm:$0xff]  ;;  %s1045_s20 = scalar_select %p468_p5, 1, 0 }
  0x4c   : > { %925 = vmatprep.subr.bf16.mxu0 %v1607_v56  ;;  %968 = vmatprep.subr.bf16.mxu1 %v1615_v59 }
  0x4f   : > { %926 = vmatpush1.bf16.msra.mxu0 %v1611_v58  ;;  %969 = vmatpush1.bf16.msra.mxu1 %v1618_v61 }
  0x50   : > { %927 = vmatprep.subr.bf16.mxu0 %v1613_v60  ;;  %970 = vmatprep.subr.bf16.mxu1 %v1621_v63 }
  0x53   : > { %928 = vmatpush1.bf16.msra.mxu0 %v1617_v62  ;;  %971 = vmatpush1.bf16.msra.mxu1 %v1624_v1 }
  0x54   : > { %929 = vmatprep.subr.bf16.mxu0 %v1619_v0  ;;  %972 = vmatprep.subr.bf16.mxu1 %v1625_v5 }
  0x57   : > { %930 = vmatpush1.bf16.msra.mxu0 %v1623_v3  ;;  %973 = vmatpush1.bf16.msra.mxu1 %v1627_v7 }
  0x5a   : > { %932 = vmatmul.mubr.bf16.vlgmr.msra.gmra.mrb[0].mxu0 %v556_v6  ;;  %975 = vmatmul.mubr.bf16.vlgmr.msra.gmra.mrb[0].mxu1 %v556_v6  ;;  %v1046_v6 = vstv %s1045_s20 }
  0x5b   : > { %vm1047_vm0 = vcmp.eq.s32.totalorder %v1046_v6, 1 }
 0x12d   : > { %v933_v16 = vpop.f32.mrb[0].mxu0  ;;  %v976_v26 = vpop.f32.mrb[0].mxu1 }
 0x12e   : > { %v934_v17 = vadd.f32 %v933_v16, %v562_v13  ;;  %v935_v18 = vpop.f32.mrb[1].mxu0  ;;  %v978_v29 = vpop.f32.mrb[1].mxu1  ;;  %v977_v31 = vadd.f32 %v976_v26, %v570_v19  ;;  %v1648_v16 = vld [vmem:[%s1918_s5] sm:$0xff] (!%p1458_p7)  }
 0x12f   : > { %v936_v21 = vadd.f32 %v935_v18, %v566_v15  ;;  %v937_v22 = vpop.f32.mrb[2].mxu0  ;;  %v980_v33 = vpop.f32.mrb[2].mxu1  ;;  %v979_v37 = vadd.f32 %v978_v29, %v574_v32  ;;  %v1651_v18 = vld [vmem:[%s1918_s5 + $0x18] sm:$0xff] (!%p1458_p7)  }
 0x130   : > { %v995_v23 = vmul.f32 0.5, %v934_v17  ;;  %v938_v24 = vadd.f32 %v937_v22, %v562_v13  ;;  %v939_v25 = vpop.f32.mrb[3].mxu0  ;;  %v982_v35 = vpop.f32.mrb[3].mxu1  ;;  %v981_v36 = vadd.f32 %v980_v33, %v570_v19  ;;  %v1680_v17 = vmov (!%p1458_p7), 0.0   ;;  %v1652_v19 = vld [vmem:[%s1918_s5 + $0x20] sm:$0xff] (!%p1458_p7)   ;;  %v1655_v22 = vld [vmem:[%s1918_s5 + $0x38] sm:$0xff] (!%p1458_p7)  }
 0x131   : > { %v1005_v27 = vmul.f32 0.5, %v936_v21  ;;  %v940_v28 = vadd.f32 %v939_v25, %v566_v15  ;;  %v983_v38 = vadd.f32 %v982_v35, %v574_v32  ;;  %v1019_v39 = vmul.f32 0.5, %v979_v37  ;;  %1486 = vmatprep.subr.bf16.mxu0 (!%p1458_p7), %v1680_v17  ;;  %1502 = vmatprep.mubr.msk.bf16.mxu0 (!%p1458_p7), %vm1681_vm1, %v1680_v17  ;;  %v1654_v21 = vld [vmem:[%s1918_s5 + $0x30] sm:$0xff] (!%p1458_p7)  }
 0x132   : > { %1628 = vtanh.f32 %v995_v23  ;;  %v996_v30 = vmul.f32 0.5, %v938_v24  ;;  %1487 = vmatpush3.bf16.msra.mxu0 (!%p1458_p7), %v1648_v16  ;;  %v1459_v24 = vld [vmem:[%s1919_s6] ss:$0 sm:$0xff] (!%p1458_p7) }
 0x133   : > { %1630 = vtanh.f32 %v1005_v27  ;;  %v1006_v34 = vmul.f32 0.5, %v940_v28  ;;  %v1020_v41 = vmul.f32 0.5, %v983_v38  ;;  %1488 = vmatprep.subr.bf16.mxu0 (!%p1458_p7), %v1680_v17 }
 0x134   : > { %1632 = vtanh.f32 %v996_v30 }
 0x135   : > { %1634 = vtanh.f32 %v1006_v34 }
 0x136   : > { %1636 = vtanh.f32 %v977_v31 }
 0x137   : > { %1638 = vtanh.f32 %v981_v36 }
 0x138   : > { %1640 = vtanh.f32 %v1019_v39 }
 0x139   : > { %1642 = vtanh.f32 %v1020_v41 }
 0x13c   : > { %v1629_v40 = vpop.eup %1628 }
 0x13d   : > { %v1631_v42 = vpop.eup %1630  ;;  %v999_v43 = vmul.f32 0.5, %v1629_v40 }
 0x13e   : > { %v1633_v44 = vpop.eup %1632  ;;  %v1009_v45 = vmul.f32 0.5, %v1631_v42 }
 0x13f   : > { %v1635_v46 = vpop.eup %1634  ;;  %v1001_v47 = vadd.f32 0.5, %v999_v43  ;;  %v1000_v49 = vmul.f32 0.5, %v1633_v44 }
 0x140   : > { %v1637_v50 = vpop.eup %1636  ;;  %v1011_v51 = vadd.f32 0.5, %v1009_v45  ;;  %v1010_v52 = vmul.f32 0.5, %v1635_v46 }
 0x141   : > { %v1002_v53 = vadd.f32 0.5, %v1000_v49  ;;  %v1029_v55 = vmul.f32 %v1637_v50, %v1001_v47  ;;  %v1639_v56 = vpop.eup %1638 }
 0x142   : > { %v1027_v57 = vmul.f32 %v1011_v51, %v478_v48  ;;  %v1012_v58 = vadd.f32 0.5, %v1010_v52  ;;  %v1641_v63 = vpop.eup %1640 }
 0x143   : > { %v1030_v59 = vmul.f32 %v1639_v56, %v1002_v53  ;;  %v1643_v0 = vpop.eup %1642  ;;  %v1023_v1 = vmul.f32 0.5, %v1641_v63 }
 0x144   : > { %v1028_v60 = vmul.f32 %v1012_v58, %v479_v54  ;;  %v1031_v61 = vadd.f32 %v1029_v55, %v1027_v57  ;;  %v1024_v3 = vmul.f32 0.5, %v1643_v0 }
 0x145   : > { %v1025_v5 = vadd.f32 0.5, %v1023_v1 }
 0x146   : > { %1644 = vtanh.f32 %v1031_v61  ;;  %1039 = vst [vmem:[%s1771_s26] sm:$0xff] %v1031_v61  ;;  %v1032_v62 = vadd.f32 %v1030_v59, %v1028_v60  ;;  %v1026_v9 = vadd.f32 0.5, %v1024_v3 }
 0x148   : > { %1646 = vtanh.f32 %v1032_v62  ;;  %1040 = vst [vmem:[%s1771_s26 + $0x8] sm:$0xff] %v1032_v62 }
 0x150   : > { %v1645_v7 = vpop.eup %1644 }
 0x151   : > { %v1035_v8 = vmul.f32 %v1645_v7, %v1025_v5 }
 0x152   : > { %v1647_v10 = vpop.eup %1646  ;;  %1055 = sbr.rel (%p1458_p7) target bundleno = 584 (0x248), region = 56 }
 0x153   : > { %1037 = vst [vmem:[%s1766_s23] sm:$0xff] %v1035_v8  ;;  %v1043_v11 = vadd.f32 %v1035_v8, %v1847_v2  ;;  %v1036_v12 = vmul.f32 %v1647_v10, %v1026_v9  ;;  %v1649_v2 = vld [vmem:[%s1918_s5 + $0x8] sm:$0xff] (!%p1458_p7)  }
 0x154   : > { %1489 = vmatpush3.bf16.msra.mxu0 (!%p1458_p7), %v1649_v2 }
 0x155   : > { %v1048_v13 = vsel %vm1047_vm0, %v1035_v8, %v1043_v11  ;;  %1038 = vst [vmem:[%s1766_s23 + $0x8] sm:$0xff] %v1036_v12  ;;  %v1044_v14 = vadd.f32 %v1036_v12, %v1850_v4  ;;  %v1650_v4 = vld [vmem:[%s1918_s5 + $0x10] sm:$0xff] (!%p1458_p7)   ;;  %1490 = vmatprep.subr.bf16.mxu0 (!%p1458_p7), %v1680_v17 }
 0x156   : > { %1050 = vst [vmem:[#allocation2] sm:$0xff] %v1048_v13 }
 0x157   : > { %v1049_v15 = vsel %vm1047_vm0, %v1036_v12, %v1044_v14 }
 0x158   : > { %1051 = vst [vmem:[#allocation2 + $0x10] sm:$0xff] %v1049_v15  ;;  %1491 = vmatpush3.bf16.msra.mxu0 (!%p1458_p7), %v1650_v4  ;;  %v1056_v23 = vpack.c.bf16 (!%p1458_p7), %v1049_v15, %v1048_v13 }
 0x159   : > { %1492 = vmatprep.subr.bf16.mxu0 %v1680_v17 }
 0x15c   : > { %1493 = vmatpush3.bf16.msra.mxu0 %v1651_v18 }
 0x15d   : > { %1494 = vmatprep.subr.bf16.mxu0 %v1680_v17 }
 0x160   : > { %1495 = vmatpush3.bf16.msra.mxu0 %v1652_v19 }
 0x161   : > { %1496 = vmatprep.subr.bf16.mxu0 %v1680_v17 }
 0x164   : > { %1497 = vmatpush3.bf16.msra.mxu0 %v1653_v20 }
 0x165   : > { %1498 = vmatprep.subr.bf16.mxu0 %v1680_v17 }
 0x168   : > { %1499 = vmatpush3.bf16.msra.mxu0 %v1654_v21 }
 0x169   : > { %1500 = vmatprep.subr.bf16.mxu0 %v1680_v17 }
 0x16c   : > { %1501 = vmatpush3.bf16.msra.mxu0 %v1655_v22 }
 0x16f   : > { %1503 = vmatmul.mubr.bf16.vlgmr.msra.gmra.mrb[0].mxu0 %v1056_v23 }
 0x242   : > { %v1162_v25 = vpop.f32.mrb[0].mxu0 }
 0x243   : > { %v1163_v26 = vadd.f32 %v1459_v24, %v1162_v25  ;;  %v1504_v27 = vpop.f32.mrb[1].mxu0 }
 0x244   : > { %v1165_v28 = vpop.f32.mrb[2].mxu0 }
 0x245   : > { %1169 = vst [vmem:[%s1922_s9] sm:$0xff] %v1163_v26  ;;  %v1166_v29 = vadd.f32 %v1459_v24, %v1165_v28  ;;  %v1505_v30 = vpop.f32.mrb[3].mxu0 }
 0x247   : > { %1170 = vst [vmem:[%s1922_s9 + $0x8] sm:$0xff] %v1166_v29 }
 0x248 PF: > { %s20_s11 = sadd.s32 1, %s1678_s11   ;;  %s1923_s30 = smov %s1674_s10 }
 0x249   : > { %p17_p8 = scmp.ge.s32.totalorder %s20_s11, 4   ;;  %s1924_s10 = smov %s1926_s12 }
 0x24b   :  { %19 = sbr.rel (!%p17_p8) target bundleno = 2 (0x2), region = 118 }

</bundles_post_ra>
